<compile_context>
chip_gen: v7x
topology: tpu7x:2x2x1
jax: 0.10.0
libtpu: 0.0.40
codegen_flags: <defaults>
</compile_context>

<pallas_src>
import math

import jax
import jax.numpy as jnp
from jax import lax
from jax.experimental import pallas as pl
from jax.experimental.pallas import tpu as pltpu

# ---- constants implied by NeuralRenderer_pytorch(img_size, perspective=True) ----
OFFSET_Z = 5.0                 # self.offset_z
EYE_Z = -2.732                 # renderer.eye = [0, 0, -2.732]
VIEW_ANGLE_DEG = 30.0          # neural_renderer Renderer default viewing_angle
NEAR = 0.1
FAR = 100.0
PERSP_W = math.tan(VIEW_ANGLE_DEG / 180.0 * math.pi)
REJECT_BIAS = -1e30            # added to c0 for clipped / padded faces


def _round_up(a, m):
    return ((a + m - 1) // m) * m


# --------------------------- kernel 1: vertex transform ---------------------------
def _make_vert_kernel(b_block):
    def kernel(cam_ref, v_ref, o_ref):
        base_b = pl.program_id(0) * b_block
        for bi in range(b_block):                       # static unrolled batch loop
            b = base_b + bi
            x = v_ref[bi, 0]                            # (s_chunk, 128)
            y = v_ref[bi, 1]
            z = v_ref[bi, 2]
            s = cam_ref[b, 0]
            tx = cam_ref[b, 1]
            ty = cam_ref[b, 2]
            qw = cam_ref[b, 3]
            qx = cam_ref[b, 4]
            qy = cam_ref[b, 5]
            qz = cam_ref[b, 6]
            # quat_rotate:  X_rot = q (x) (0,x,y,z) (x) conj(q)   (Hamilton products)
            t0 = x * qx + y * qy + z * qz
            t1 = x * qw - y * qz + z * qy
            t2 = x * qz + y * qw - z * qx
            t3 = -x * qy + y * qx + z * qw
            rx = qw * t1 + qx * t0 + qy * t3 - qz * t2
            ry = qw * t2 - qx * t3 + qy * t0 + qz * t1
            rz = qw * t3 + qx * t2 - qy * t1 + qz * t0
            # orthographic_proj_withz: scale, translate xy, add offset_z
            px = s * rx + tx
            # forward(): vertices[:, :, 1] *= -1
            py = -(s * ry + ty)
            # look_at(eye=[0,0,-2.732]) -> identity rotation, shift z by -eye_z
            pz = s * rz + (OFFSET_Z - EYE_Z)
            # perspective(angle=30deg): x/(z*tan(angle)), y/(z*tan(angle))
            inv = 1.0 / (pz * PERSP_W)
            o_ref[bi, 0] = px * inv
            o_ref[bi, 1] = py * inv
            o_ref[bi, 2] = pz
    return kernel


def vertex_transform(vertices, cams):
    """vertices: [B, N, 3] f32, cams: [B, 7] f32 -> camera-space projected [B, N, 3]."""
    B, N, _ = vertices.shape
    S = -(-N // 128)
    # chunk the sublane axis for very large N (keeps blocks <= ~3 MiB; v7x VMEM = 64 MiB)
    s_chunk = min(S, 2048)
    S_pad = _round_up(S, s_chunk)
    # merge all batches into one grid step when the whole problem is small
    blk_bytes = 3 * s_chunk * 128 * 4
    b_block = B if (S_pad == s_chunk and B * blk_bytes <= (2 << 20)) else 1
    n_pad = S_pad * 128

    v = jnp.zeros((B, 3, n_pad), jnp.float32)
    v = v.at[:, :, :N].set(jnp.transpose(vertices.astype(jnp.float32), (0, 2, 1)))
    v = v.reshape(B, 3, S_pad, 128)
    c = jnp.zeros((B, 8), jnp.float32).at[:, :7].set(cams.astype(jnp.float32))

    out = pl.pallas_call(
        _make_vert_kernel(b_block),
        out_shape=jax.ShapeDtypeStruct((B, 3, S_pad, 128), jnp.float32),
        grid_spec=pltpu.PrefetchScalarGridSpec(
            num_scalar_prefetch=0,
            grid=(B // b_block, S_pad // s_chunk),
            in_specs=[
                pl.BlockSpec(memory_space=pltpu.MemorySpace.SMEM),          # cams (whole)
                pl.BlockSpec((b_block, 3, s_chunk, 128),
                             lambda ib, isc: (ib, 0, isc, 0)),              # vertices
            ],
            out_specs=pl.BlockSpec((b_block, 3, s_chunk, 128),
                                   lambda ib, isc: (ib, 0, isc, 0)),
        ),
        compiler_params=pltpu.CompilerParams(
            dimension_semantics=("parallel", "parallel")),
    )(c, v)
    out = out.reshape(B, 3, n_pad)[:, :, :N]
    return jnp.transpose(out, (0, 2, 1))


# -------------------------- kernel 2: silhouette rasterizer --------------------------
def _make_raster_kernel(h2, pix_sub, f_sub, n_sub):
    h2f = float(h2)
    inv_h2 = 1.0 / float(h2)

    def chunk_max(fc_blk, xp_all, yp_all, cov):
        # fc_blk: (f_sub, 16) per-face affine edge coefficients (clip reject folded
        # into c0).  Broadcasts of the 9 constant columns are hoisted out of the
        # per-lane-group loop (JAX does not CSE broadcast_in_dim).
        shp = (f_sub, 128)
        a0 = jnp.broadcast_to(fc_blk[:, 0:1], shp)
        b0 = jnp.broadcast_to(fc_blk[:, 1:2], shp)
        c0 = jnp.broadcast_to(fc_blk[:, 2:3], shp)
        a1 = jnp.broadcast_to(fc_blk[:, 3:4], shp)
        b1 = jnp.broadcast_to(fc_blk[:, 4:5], shp)
        c1 = jnp.broadcast_to(fc_blk[:, 5:6], shp)
        a2 = jnp.broadcast_to(fc_blk[:, 6:7], shp)
        b2 = jnp.broadcast_to(fc_blk[:, 7:8], shp)
        c2 = jnp.broadcast_to(fc_blk[:, 8:9], shp)
        groups = []
        for i in range(pix_sub):                         # static unrolled lane groups
            xp = xp_all[i:i + 1, :]                      # (1, 128)
            yp = yp_all[i:i + 1, :]
            # affine edge functions (NMR "inside" = all >= 0; fill_back covers winding)
            e0 = a0 * xp + b0 * yp + c0                  # (f_sub, 128)
            e1 = a1 * xp + b1 * yp + c1
            e2 = a2 * xp + b2 * yp + c2
            m = jnp.minimum(jnp.minimum(e0, e1), e2)     # inside  <=>  m >= 0
            groups.append(jnp.max(m, axis=0, keepdims=True))
        return jnp.maximum(cov, jnp.concatenate(groups, axis=0))   # (pix_sub, 128)

    def kernel(fc_ref, out_ref):
        pt = pl.program_id(1)
        # lane-dense packed pixel coords for this tile:
        #   packed index p = pt*pix_sub*128 + sub*128 + lane ; row = p // h2, col = p % h2
        sub = lax.broadcasted_iota(jnp.float32, (pix_sub, 128), 0)
        lane = lax.broadcasted_iota(jnp.float32, (pix_sub, 128), 1)
        base = (pt * (pix_sub * 128)).astype(jnp.float32)
        p = base + sub * 128.0 + lane
        row = jnp.floor((p + 0.5) * inv_h2)              # exact for h2 <= 512 (margin 0.5/h2)
        col = p - row * h2f
        xp_all = (2.0 * col + 1.0 - h2f) * inv_h2        # (pix_sub, 128) NDC x
        yp_all = (h2f - 1.0 - 2.0 * row) * inv_h2        # row 0 = top (+y), NMR flip

        cov0 = jnp.full((pix_sub, 128), -1.0, jnp.float32)
        if n_sub == 1:
            cov = chunk_max(fc_ref[0], xp_all, yp_all, cov0)
        else:
            def body(s, cov):
                off = pl.multiple_of(s * f_sub, f_sub)
                blk = fc_ref[0, pl.ds(off, f_sub), :]
                return chunk_max(blk, xp_all, yp_all, cov)
            cov = lax.fori_loop(0, n_sub, body, cov0, unroll=(n_sub <= 4))
        out_ref[0] = jnp.where(cov >= 0.0, 1.0, 0.0)

    return kernel


def _face_constants(face_verts):
    """[B, F, 3, 3] projected triangles -> [B, F, 9] affine edge coeffs (clip folded)."""
    fv = face_verts.astype(jnp.float32)
    x0, y0, z0 = fv[..., 0, 0], fv[..., 0, 1], fv[..., 0, 2]
    x1, y1, z1 = fv[..., 1, 0], fv[..., 1, 1], fv[..., 1, 2]
    x2, y2, z2 = fv[..., 2, 0], fv[..., 2, 1], fv[..., 2, 2]
    # e0 = (yp-y0)(x1-x0) - (xp-x0)(y1-y0) = A0*xp + B0*yp + C0, etc.
    a0 = y0 - y1; b0 = x1 - x0; c0 = x0 * (y1 - y0) - y0 * (x1 - x0)
    a1 = y1 - y2; b1 = x2 - x1; c1 = x1 * (y2 - y1) - y1 * (x2 - x1)
    a2 = y2 - y0; b2 = x0 - x2; c2 = x2 * (y0 - y2) - y2 * (x0 - x2)
    # NEAR/FAR hoisted per-face: interpolated depth (harmonic mean of positive vertex
    # z's) is bracketed by min/max vertex z, so fold the clip reject into c0 and drop
    # all per-pixel depth work from the kernel.
    zmin = jnp.minimum(jnp.minimum(z0, z1), z2)
    zmax = jnp.maximum(jnp.maximum(z0, z1), z2)
    reject = jnp.where((zmin > NEAR) & (zmax < FAR), 0.0, REJECT_BIAS)
    return jnp.stack([a0, b0, c0 + reject, a1, b1, c1, a2, b2, c2], axis=-1)


def _choose_pix_sub(n_groups, batch):
    # multiple of 8 (unmasked sublane stores); keep B * n_pixel_tiles >= 2 when
    # possible so both v7x TensorCores get work.
    for cand in (32, 16, 8):
        if n_groups >= cand and batch * (_round_up(n_groups, cand) // cand) >= 2:
            return cand
    return 8


def rasterize_silhouette(face_verts, img_size):
    """face_verts: [B, F2, 3, 3] projected triangles -> silhouette [B, img_size, img_size]."""
    B, F2 = face_verts.shape[:2]
    h2 = 2 * img_size                                    # anti_aliasing: render at 2x
    p2 = h2 * h2
    # pixel lane-groups (128 packed pixels each) and sublane tile per grid step
    n_groups = -(-p2 // 128)
    pix_sub = _choose_pix_sub(n_groups, B)
    n_groups_pad = _round_up(n_groups, pix_sub)
    # face sub-chunks iterated in-kernel (bounds vreg live ranges; table stays VMEM-resident)
    f_sub = min(32, _round_up(F2, 8))
    f_pad = _round_up(F2, f_sub)
    n_sub = f_pad // f_sub

    fc = _face_constants(face_verts)                     # (B, F2, 9)
    # padded faces get c0 = REJECT_BIAS so their min-edge is always negative
    fcp = jnp.zeros((B, f_pad, 16), jnp.float32).at[:, :, 2].set(REJECT_BIAS)
    fcp = fcp.at[:, :F2, :9].set(fc)

    out_packed = pl.pallas_call(
        _make_raster_kernel(h2, pix_sub, f_sub, n_sub),
        out_shape=jax.ShapeDtypeStruct((B, n_groups_pad, 128), jnp.float32),
        grid_spec=pltpu.PrefetchScalarGridSpec(
            num_scalar_prefetch=0,
            grid=(B, n_groups_pad // pix_sub),
            # face table block index ignores the pixel-tile axis -> DMA'd once per
            # batch item and kept resident in VMEM across all pixel tiles.
            in_specs=[pl.BlockSpec((1, f_pad, 16), lambda b, pt: (b, 0, 0))],
            out_specs=pl.BlockSpec((1, pix_sub, 128), lambda b, pt: (b, pt, 0)),
        ),
        compiler_params=pltpu.CompilerParams(
            dimension_semantics=("parallel", "parallel")),
    )(fcp)

    alpha2 = out_packed.reshape(B, n_groups_pad * 128)[:, :p2].reshape(B, h2, h2)
    # anti-aliasing 2x2 average pool (glue; fold into kernel only for large images)
    return alpha2.reshape(B, img_size, 2, img_size, 2).mean(axis=(2, 4))


# ------------------------------------ forward ------------------------------------
def neural_renderer_forward(vertices, faces, cams, img_size=16):
    """NeuralRenderer_pytorch.forward with textures=None -> silhouette masks [B, S, S]."""
    verts = vertex_transform(vertices, cams)                       # Pallas kernel 1
    faces2 = jnp.concatenate([faces, faces[:, :, ::-1]], axis=1)   # fill_back
    face_verts = jax.vmap(lambda v, f: v[f])(verts, faces2)        # vertices_to_faces (glue)
    # TODO(synk): fuse transform + gather + face constants into one kernel for very
    # large meshes (avoids two small HBM round-trips); glue is negligible here.
    return rasterize_silhouette(face_verts, img_size)              # Pallas kernel 2


# ----------------------------- pure-JAX reference -----------------------------
def _ref_forward(vertices, faces, cams, img_size):
    B, N, _ = vertices.shape
    s = cams[:, 0:1]; tx = cams[:, 1:2]; ty = cams[:, 2:3]
    qw = cams[:, 3:4]; qx = cams[:, 4:5]; qy = cams[:, 5:6]; qz = cams[:, 6:7]
    x, y, z = vertices[:, :, 0], vertices[:, :, 1], vertices[:, :, 2]
    t0 = x * qx + y * qy + z * qz
    t1 = x * qw - y * qz + z * qy
    t2 = x * qz + y * qw - z * qx
    t3 = -x * qy + y * qx + z * qw
    rx = qw * t1 + qx * t0 + qy * t3 - qz * t2
    ry = qw * t2 - qx * t3 + qy * t0 + qz * t1
    rz = qw * t3 + qx * t2 - qy * t1 + qz * t0
    px = s * rx + tx
    py = -(s * ry + ty)
    pz = s * rz + OFFSET_Z - EYE_Z
    px = px / (pz * PERSP_W)
    py = py / (pz * PERSP_W)
    verts = jnp.stack([px, py, pz], axis=-1)
    faces2 = jnp.concatenate([faces, faces[:, :, ::-1]], axis=1)
    fvert = jax.vmap(lambda v, f: v[f])(verts, faces2)             # [B, F2, 3, 3]
    is2 = 2 * img_size
    yp = (is2 - 1.0 - 2.0 * jnp.arange(is2, dtype=jnp.float32)) / is2
    xp = (2.0 * jnp.arange(is2, dtype=jnp.float32) + 1.0 - is2) / is2
    YP = yp[None, None, :, None]
    XP = xp[None, None, None, :]
    def g(k, c):
        return fvert[:, :, k, c][:, :, None, None]
    X0, Y0, Z0 = g(0, 0), g(0, 1), g(0, 2)
    X1, Y1, Z1 = g(1, 0), g(1, 1), g(1, 2)
    X2, Y2, Z2 = g(2, 0), g(2, 1), g(2, 2)
    e0 = (YP - Y0) * (X1 - X0) - (XP - X0) * (Y1 - Y0)
    e1 = (YP - Y1) * (X2 - X1) - (XP - X1) * (Y2 - Y1)
    e2 = (YP - Y2) * (X0 - X2) - (XP - X2) * (Y0 - Y2)
    inside = (e0 >= 0) & (e1 >= 0) & (e2 >= 0)
    w0 = jnp.clip(e1, 0.0, 1.0); w1 = jnp.clip(e2, 0.0, 1.0); w2 = jnp.clip(e0, 0.0, 1.0)
    wsum = jnp.maximum(w0 + w1 + w2, 1e-12)
    zp = wsum / (w0 / Z0 + w1 / Z1 + w2 / Z2)
    vis = inside & (zp > NEAR) & (zp < FAR)
    alpha2 = jnp.max(jnp.where(vis, 1.0, 0.0), axis=1)
    return alpha2.reshape(B, img_size, 2, img_size, 2).mean(axis=(2, 4))


# -------------------------------------- main --------------------------------------
if __name__ == "__main__":
    key = jax.random.PRNGKey(0)
    k1, k2, k3 = jax.random.split(key, 3)

    B, N, F, img_size = 2, 8, 12, 16
    # deterministic small mesh: a jittered unit cube (8 verts, 12 triangles)
    cube_v = jnp.array(
        [[x, y, z] for x in (-0.5, 0.5) for y in (-0.5, 0.5) for z in (-0.5, 0.5)],
        jnp.float32)
    cube_f = jnp.array(
        [[0, 1, 3], [0, 3, 2], [4, 5, 7], [4, 7, 6],
         [0, 1, 5], [0, 5, 4], [2, 3, 7], [2, 7, 6],
         [0, 2, 6], [0, 6, 4], [1, 3, 7], [1, 7, 5]], jnp.int32)
    vertices = jnp.broadcast_to(cube_v, (B, N, 3)) + 0.05 * jax.random.normal(k1, (B, N, 3))
    faces = jnp.broadcast_to(cube_f, (B, F, 3))
    quat = jax.random.normal(k2, (B, 4))
    quat = quat / jnp.linalg.norm(quat, axis=-1, keepdims=True)
    cams = jnp.concatenate(
        [jnp.array([[0.8], [0.9]], jnp.float32),
         0.1 * jax.random.normal(k3, (B, 2)),
         quat], axis=-1).astype(jnp.float32)

    mask = jax.block_until_ready(neural_renderer_forward(vertices, faces, cams, img_size))

    assert mask.shape == (B, img_size, img_size), mask.shape
    ref = _ref_forward(vertices, faces, cams, img_size)
    err = float(jnp.mean(jnp.abs(mask - ref)))
    assert err < 5e-3, f"mask mismatch vs reference: {err}"
    assert float(jnp.max(mask)) > 0.5, "silhouette unexpectedly empty"

    print("KERNEL_OK")
</pallas_src>

<mosaic_0001>
module attributes {stable_mosaic.version = 11 : i64} {
  func.func @kernel(%arg0: i32, %arg1: i32, %arg2: memref<2x8xf32, #tpu.memory_space<smem>>, %arg3: memref<2x3x1x128xf32, #tpu.memory_space<vmem>>, %arg4: memref<2x3x1x128xf32, #tpu.memory_space<vmem>>) attributes {dimension_semantics = [#tpu.dimension_semantics<parallel>, #tpu.dimension_semantics<parallel>], iteration_bounds = array<i64: 1, 1>, scalar_prefetch = 0 : i64, scratch_operands = 0 : i64, tpu.core_type = #tpu.core_type<tc>, window_params = [{transform_indices = @transform_0, window_bounds = array<i64: 2, 8>}, {transform_indices = @transform_1, window_bounds = array<i64: 2, 3, 1, 128>}, {transform_indices = @transform_2, window_bounds = array<i64: 2, 3, 1, 128>}]} {
    %c2_i32 = arith.constant 2 : i32
    %0 = arith.muli %arg0, %c2_i32 : i32
    %c0_i32 = arith.constant 0 : i32
    %1 = arith.addi %0, %c0_i32 : i32
    %c0 = arith.constant 0 : index
    %c0_0 = arith.constant 0 : index
    %c0_1 = arith.constant 0 : index
    %c0_2 = arith.constant 0 : index
    %2 = vector.load %arg3[%c0, %c0_0, %c0_1, %c0_2] : memref<2x3x1x128xf32, #tpu.memory_space<vmem>>, vector<1x1x1x128xf32>
    %3 = vector.shape_cast %2 : vector<1x1x1x128xf32> to vector<1x128xf32>
    %c0_3 = arith.constant 0 : index
    %c1 = arith.constant 1 : index
    %c0_4 = arith.constant 0 : index
    %c0_5 = arith.constant 0 : index
    %4 = vector.load %arg3[%c0_3, %c1, %c0_4, %c0_5] : memref<2x3x1x128xf32, #tpu.memory_space<vmem>>, vector<1x1x1x128xf32>
    %5 = vector.shape_cast %4 : vector<1x1x1x128xf32> to vector<1x128xf32>
    %c0_6 = arith.constant 0 : index
    %c2 = arith.constant 2 : index
    %c0_7 = arith.constant 0 : index
    %c0_8 = arith.constant 0 : index
    %6 = vector.load %arg3[%c0_6, %c2, %c0_7, %c0_8] : memref<2x3x1x128xf32, #tpu.memory_space<vmem>>, vector<1x1x1x128xf32>
    %7 = vector.shape_cast %6 : vector<1x1x1x128xf32> to vector<1x128xf32>
    %8 = arith.index_cast %1 : i32 to index
    %c0_9 = arith.constant 0 : index
    %9 = memref.load %arg2[%8, %c0_9] : memref<2x8xf32, #tpu.memory_space<smem>>
    %10 = arith.index_cast %1 : i32 to index
    %c1_10 = arith.constant 1 : index
    %11 = memref.load %arg2[%10, %c1_10] : memref<2x8xf32, #tpu.memory_space<smem>>
    %12 = arith.index_cast %1 : i32 to index
    %c2_11 = arith.constant 2 : index
    %13 = memref.load %arg2[%12, %c2_11] : memref<2x8xf32, #tpu.memory_space<smem>>
    %14 = arith.index_cast %1 : i32 to index
    %c3 = arith.constant 3 : index
    %15 = memref.load %arg2[%14, %c3] : memref<2x8xf32, #tpu.memory_space<smem>>
    %16 = arith.index_cast %1 : i32 to index
    %c4 = arith.constant 4 : index
    %17 = memref.load %arg2[%16, %c4] : memref<2x8xf32, #tpu.memory_space<smem>>
    %18 = arith.index_cast %1 : i32 to index
    %c5 = arith.constant 5 : index
    %19 = memref.load %arg2[%18, %c5] : memref<2x8xf32, #tpu.memory_space<smem>>
    %20 = arith.index_cast %1 : i32 to index
    %c6 = arith.constant 6 : index
    %21 = memref.load %arg2[%20, %c6] : memref<2x8xf32, #tpu.memory_space<smem>>
    %22 = vector.broadcast %17 : f32 to vector<1x128xf32>
    %23 = arith.mulf %3, %22 : vector<1x128xf32>
    %24 = vector.broadcast %19 : f32 to vector<1x128xf32>
    %25 = arith.mulf %5, %24 : vector<1x128xf32>
    %26 = arith.addf %23, %25 : vector<1x128xf32>
    %27 = vector.broadcast %21 : f32 to vector<1x128xf32>
    %28 = arith.mulf %7, %27 : vector<1x128xf32>
    %29 = arith.addf %26, %28 : vector<1x128xf32>
    %30 = vector.broadcast %15 : f32 to vector<1x128xf32>
    %31 = arith.mulf %3, %30 : vector<1x128xf32>
    %32 = vector.broadcast %21 : f32 to vector<1x128xf32>
    %33 = arith.mulf %5, %32 : vector<1x128xf32>
    %34 = arith.subf %31, %33 : vector<1x128xf32>
    %35 = vector.broadcast %19 : f32 to vector<1x128xf32>
    %36 = arith.mulf %7, %35 : vector<1x128xf32>
    %37 = arith.addf %34, %36 : vector<1x128xf32>
    %38 = vector.broadcast %21 : f32 to vector<1x128xf32>
    %39 = arith.mulf %3, %38 : vector<1x128xf32>
    %40 = vector.broadcast %15 : f32 to vector<1x128xf32>
    %41 = arith.mulf %5, %40 : vector<1x128xf32>
    %42 = arith.addf %39, %41 : vector<1x128xf32>
    %43 = vector.broadcast %17 : f32 to vector<1x128xf32>
    %44 = arith.mulf %7, %43 : vector<1x128xf32>
    %45 = arith.subf %42, %44 : vector<1x128xf32>
    %cst = arith.constant 0.000000e+00 : f32
    %46 = vector.broadcast %cst : f32 to vector<1x128xf32>
    %47 = arith.subf %46, %3 : vector<1x128xf32>
    %48 = vector.broadcast %19 : f32 to vector<1x128xf32>
    %49 = arith.mulf %47, %48 : vector<1x128xf32>
    %50 = vector.broadcast %17 : f32 to vector<1x128xf32>
    %51 = arith.mulf %5, %50 : vector<1x128xf32>
    %52 = arith.addf %49, %51 : vector<1x128xf32>
    %53 = vector.broadcast %15 : f32 to vector<1x128xf32>
    %54 = arith.mulf %7, %53 : vector<1x128xf32>
    %55 = arith.addf %52, %54 : vector<1x128xf32>
    %56 = vector.broadcast %15 : f32 to vector<1x128xf32>
    %57 = arith.mulf %56, %37 : vector<1x128xf32>
    %58 = vector.broadcast %17 : f32 to vector<1x128xf32>
    %59 = arith.mulf %58, %29 : vector<1x128xf32>
    %60 = arith.addf %57, %59 : vector<1x128xf32>
    %61 = vector.broadcast %19 : f32 to vector<1x128xf32>
    %62 = arith.mulf %61, %55 : vector<1x128xf32>
    %63 = arith.addf %60, %62 : vector<1x128xf32>
    %64 = vector.broadcast %21 : f32 to vector<1x128xf32>
    %65 = arith.mulf %64, %45 : vector<1x128xf32>
    %66 = arith.subf %63, %65 : vector<1x128xf32>
    %67 = vector.broadcast %15 : f32 to vector<1x128xf32>
    %68 = arith.mulf %67, %45 : vector<1x128xf32>
    %69 = vector.broadcast %17 : f32 to vector<1x128xf32>
    %70 = arith.mulf %69, %55 : vector<1x128xf32>
    %71 = arith.subf %68, %70 : vector<1x128xf32>
    %72 = vector.broadcast %19 : f32 to vector<1x128xf32>
    %73 = arith.mulf %72, %29 : vector<1x128xf32>
    %74 = arith.addf %71, %73 : vector<1x128xf32>
    %75 = vector.broadcast %21 : f32 to vector<1x128xf32>
    %76 = arith.mulf %75, %37 : vector<1x128xf32>
    %77 = arith.addf %74, %76 : vector<1x128xf32>
    %78 = vector.broadcast %15 : f32 to vector<1x128xf32>
    %79 = arith.mulf %78, %55 : vector<1x128xf32>
    %80 = vector.broadcast %17 : f32 to vector<1x128xf32>
    %81 = arith.mulf %80, %45 : vector<1x128xf32>
    %82 = arith.addf %79, %81 : vector<1x128xf32>
    %83 = vector.broadcast %19 : f32 to vector<1x128xf32>
    %84 = arith.mulf %83, %37 : vector<1x128xf32>
    %85 = arith.subf %82, %84 : vector<1x128xf32>
    %86 = vector.broadcast %21 : f32 to vector<1x128xf32>
    %87 = arith.mulf %86, %29 : vector<1x128xf32>
    %88 = arith.addf %85, %87 : vector<1x128xf32>
    %89 = vector.broadcast %9 : f32 to vector<1x128xf32>
    %90 = arith.mulf %89, %66 : vector<1x128xf32>
    %91 = vector.broadcast %11 : f32 to vector<1x128xf32>
    %92 = arith.addf %90, %91 : vector<1x128xf32>
    %93 = vector.broadcast %9 : f32 to vector<1x128xf32>
    %94 = arith.mulf %93, %77 : vector<1x128xf32>
    %95 = vector.broadcast %13 : f32 to vector<1x128xf32>
    %96 = arith.addf %94, %95 : vector<1x128xf32>
    %cst_12 = arith.constant 0.000000e+00 : f32
    %97 = vector.broadcast %cst_12 : f32 to vector<1x128xf32>
    %98 = arith.subf %97, %96 : vector<1x128xf32>
    %99 = vector.broadcast %9 : f32 to vector<1x128xf32>
    %100 = arith.mulf %99, %88 : vector<1x128xf32>
    %cst_13 = arith.constant 7.732000e+00 : f32
    %101 = vector.broadcast %cst_13 : f32 to vector<1x128xf32>
    %102 = arith.addf %100, %101 : vector<1x128xf32>
    %cst_14 = arith.constant 0.577350259 : f32
    %103 = vector.broadcast %cst_14 : f32 to vector<1x128xf32>
    %104 = arith.mulf %102, %103 : vector<1x128xf32>
    %cst_15 = arith.constant 1.000000e+00 : f32
    %105 = vector.broadcast %cst_15 : f32 to vector<1x128xf32>
    %106 = arith.divf %105, %104 : vector<1x128xf32>
    %107 = arith.mulf %92, %106 : vector<1x128xf32>
    %c0_16 = arith.constant 0 : index
    %c0_17 = arith.constant 0 : index
    %c0_18 = arith.constant 0 : index
    %c0_19 = arith.constant 0 : index
    %108 = vector.load %arg4[%c0_16, %c0_17, %c0_18, %c0_19] : memref<2x3x1x128xf32, #tpu.memory_space<vmem>>, vector<1x1x1x128xf32>
    %109 = vector.shape_cast %108 : vector<1x1x1x128xf32> to vector<1x128xf32>
    %110 = vector.shape_cast %107 : vector<1x128xf32> to vector<1x1x1x128xf32>
    tpu.vector_store %arg4[%c0_16, %c0_17, %c0_18, %c0_19], %110 {strides = array<i32>} : memref<2x3x1x128xf32, #tpu.memory_space<vmem>>, vector<1x1x1x128xf32>,
    %111 = arith.mulf %98, %106 : vector<1x128xf32>
    %c0_20 = arith.constant 0 : index
    %c1_21 = arith.constant 1 : index
    %c0_22 = arith.constant 0 : index
    %c0_23 = arith.constant 0 : index
    %112 = vector.load %arg4[%c0_20, %c1_21, %c0_22, %c0_23] : memref<2x3x1x128xf32, #tpu.memory_space<vmem>>, vector<1x1x1x128xf32>
    %113 = vector.shape_cast %112 : vector<1x1x1x128xf32> to vector<1x128xf32>
    %114 = vector.shape_cast %111 : vector<1x128xf32> to vector<1x1x1x128xf32>
    tpu.vector_store %arg4[%c0_20, %c1_21, %c0_22, %c0_23], %114 {strides = array<i32>} : memref<2x3x1x128xf32, #tpu.memory_space<vmem>>, vector<1x1x1x128xf32>,
    %c0_24 = arith.constant 0 : index
    %c2_25 = arith.constant 2 : index
    %c0_26 = arith.constant 0 : index
    %c0_27 = arith.constant 0 : index
    %115 = vector.load %arg4[%c0_24, %c2_25, %c0_26, %c0_27] : memref<2x3x1x128xf32, #tpu.memory_space<vmem>>, vector<1x1x1x128xf32>
    %116 = vector.shape_cast %115 : vector<1x1x1x128xf32> to vector<1x128xf32>
    %117 = vector.shape_cast %102 : vector<1x128xf32> to vector<1x1x1x128xf32>
    tpu.vector_store %arg4[%c0_24, %c2_25, %c0_26, %c0_27], %117 {strides = array<i32>} : memref<2x3x1x128xf32, #tpu.memory_space<vmem>>, vector<1x1x1x128xf32>,
    %c1_i32 = arith.constant 1 : i32
    %118 = arith.addi %0, %c1_i32 : i32
    %c1_28 = arith.constant 1 : index
    %c0_29 = arith.constant 0 : index
    %c0_30 = arith.constant 0 : index
    %c0_31 = arith.constant 0 : index
    %119 = vector.load %arg3[%c1_28, %c0_29, %c0_30, %c0_31] : memref<2x3x1x128xf32, #tpu.memory_space<vmem>>, vector<1x1x1x128xf32>
    %120 = vector.shape_cast %119 : vector<1x1x1x128xf32> to vector<1x128xf32>
    %c1_32 = arith.constant 1 : index
    %c1_33 = arith.constant 1 : index
    %c0_34 = arith.constant 0 : index
    %c0_35 = arith.constant 0 : index
    %121 = vector.load %arg3[%c1_32, %c1_33, %c0_34, %c0_35] : memref<2x3x1x128xf32, #tpu.memory_space<vmem>>, vector<1x1x1x128xf32>
    %122 = vector.shape_cast %121 : vector<1x1x1x128xf32> to vector<1x128xf32>
    %c1_36 = arith.constant 1 : index
    %c2_37 = arith.constant 2 : index
    %c0_38 = arith.constant 0 : index
    %c0_39 = arith.constant 0 : index
    %123 = vector.load %arg3[%c1_36, %c2_37, %c0_38, %c0_39] : memref<2x3x1x128xf32, #tpu.memory_space<vmem>>, vector<1x1x1x128xf32>
    %124 = vector.shape_cast %123 : vector<1x1x1x128xf32> to vector<1x128xf32>
    %125 = arith.index_cast %118 : i32 to index
    %c0_40 = arith.constant 0 : index
    %126 = memref.load %arg2[%125, %c0_40] : memref<2x8xf32, #tpu.memory_space<smem>>
    %127 = arith.index_cast %118 : i32 to index
    %c1_41 = arith.constant 1 : index
    %128 = memref.load %arg2[%127, %c1_41] : memref<2x8xf32, #tpu.memory_space<smem>>
    %129 = arith.index_cast %118 : i32 to index
    %c2_42 = arith.constant 2 : index
    %130 = memref.load %arg2[%129, %c2_42] : memref<2x8xf32, #tpu.memory_space<smem>>
    %131 = arith.index_cast %118 : i32 to index
    %c3_43 = arith.constant 3 : index
    %132 = memref.load %arg2[%131, %c3_43] : memref<2x8xf32, #tpu.memory_space<smem>>
    %133 = arith.index_cast %118 : i32 to index
    %c4_44 = arith.constant 4 : index
    %134 = memref.load %arg2[%133, %c4_44] : memref<2x8xf32, #tpu.memory_space<smem>>
    %135 = arith.index_cast %118 : i32 to index
    %c5_45 = arith.constant 5 : index
    %136 = memref.load %arg2[%135, %c5_45] : memref<2x8xf32, #tpu.memory_space<smem>>
    %137 = arith.index_cast %118 : i32 to index
    %c6_46 = arith.constant 6 : index
    %138 = memref.load %arg2[%137, %c6_46] : memref<2x8xf32, #tpu.memory_space<smem>>
    %139 = vector.broadcast %134 : f32 to vector<1x128xf32>
    %140 = arith.mulf %120, %139 : vector<1x128xf32>
    %141 = vector.broadcast %136 : f32 to vector<1x128xf32>
    %142 = arith.mulf %122, %141 : vector<1x128xf32>
    %143 = arith.addf %140, %142 : vector<1x128xf32>
    %144 = vector.broadcast %138 : f32 to vector<1x128xf32>
    %145 = arith.mulf %124, %144 : vector<1x128xf32>
    %146 = arith.addf %143, %145 : vector<1x128xf32>
    %147 = vector.broadcast %132 : f32 to vector<1x128xf32>
    %148 = arith.mulf %120, %147 : vector<1x128xf32>
    %149 = vector.broadcast %138 : f32 to vector<1x128xf32>
    %150 = arith.mulf %122, %149 : vector<1x128xf32>
    %151 = arith.subf %148, %150 : vector<1x128xf32>
    %152 = vector.broadcast %136 : f32 to vector<1x128xf32>
    %153 = arith.mulf %124, %152 : vector<1x128xf32>
    %154 = arith.addf %151, %153 : vector<1x128xf32>
    %155 = vector.broadcast %138 : f32 to vector<1x128xf32>
    %156 = arith.mulf %120, %155 : vector<1x128xf32>
    %157 = vector.broadcast %132 : f32 to vector<1x128xf32>
    %158 = arith.mulf %122, %157 : vector<1x128xf32>
    %159 = arith.addf %156, %158 : vector<1x128xf32>
    %160 = vector.broadcast %134 : f32 to vector<1x128xf32>
    %161 = arith.mulf %124, %160 : vector<1x128xf32>
    %162 = arith.subf %159, %161 : vector<1x128xf32>
    %cst_47 = arith.constant 0.000000e+00 : f32
    %163 = vector.broadcast %cst_47 : f32 to vector<1x128xf32>
    %164 = arith.subf %163, %120 : vector<1x128xf32>
    %165 = vector.broadcast %136 : f32 to vector<1x128xf32>
    %166 = arith.mulf %164, %165 : vector<1x128xf32>
    %167 = vector.broadcast %134 : f32 to vector<1x128xf32>
    %168 = arith.mulf %122, %167 : vector<1x128xf32>
    %169 = arith.addf %166, %168 : vector<1x128xf32>
    %170 = vector.broadcast %132 : f32 to vector<1x128xf32>
    %171 = arith.mulf %124, %170 : vector<1x128xf32>
    %172 = arith.addf %169, %171 : vector<1x128xf32>
    %173 = vector.broadcast %132 : f32 to vector<1x128xf32>
    %174 = arith.mulf %173, %154 : vector<1x128xf32>
    %175 = vector.broadcast %134 : f32 to vector<1x128xf32>
    %176 = arith.mulf %175, %146 : vector<1x128xf32>
    %177 = arith.addf %174, %176 : vector<1x128xf32>
    %178 = vector.broadcast %136 : f32 to vector<1x128xf32>
    %179 = arith.mulf %178, %172 : vector<1x128xf32>
    %180 = arith.addf %177, %179 : vector<1x128xf32>
    %181 = vector.broadcast %138 : f32 to vector<1x128xf32>
    %182 = arith.mulf %181, %162 : vector<1x128xf32>
    %183 = arith.subf %180, %182 : vector<1x128xf32>
    %184 = vector.broadcast %132 : f32 to vector<1x128xf32>
    %185 = arith.mulf %184, %162 : vector<1x128xf32>
    %186 = vector.broadcast %134 : f32 to vector<1x128xf32>
    %187 = arith.mulf %186, %172 : vector<1x128xf32>
    %188 = arith.subf %185, %187 : vector<1x128xf32>
    %189 = vector.broadcast %136 : f32 to vector<1x128xf32>
    %190 = arith.mulf %189, %146 : vector<1x128xf32>
    %191 = arith.addf %188, %190 : vector<1x128xf32>
    %192 = vector.broadcast %138 : f32 to vector<1x128xf32>
    %193 = arith.mulf %192, %154 : vector<1x128xf32>
    %194 = arith.addf %191, %193 : vector<1x128xf32>
    %195 = vector.broadcast %132 : f32 to vector<1x128xf32>
    %196 = arith.mulf %195, %172 : vector<1x128xf32>
    %197 = vector.broadcast %134 : f32 to vector<1x128xf32>
    %198 = arith.mulf %197, %162 : vector<1x128xf32>
    %199 = arith.addf %196, %198 : vector<1x128xf32>
    %200 = vector.broadcast %136 : f32 to vector<1x128xf32>
    %201 = arith.mulf %200, %154 : vector<1x128xf32>
    %202 = arith.subf %199, %201 : vector<1x128xf32>
    %203 = vector.broadcast %138 : f32 to vector<1x128xf32>
    %204 = arith.mulf %203, %146 : vector<1x128xf32>
    %205 = arith.addf %202, %204 : vector<1x128xf32>
    %206 = vector.broadcast %126 : f32 to vector<1x128xf32>
    %207 = arith.mulf %206, %183 : vector<1x128xf32>
    %208 = vector.broadcast %128 : f32 to vector<1x128xf32>
    %209 = arith.addf %207, %208 : vector<1x128xf32>
    %210 = vector.broadcast %126 : f32 to vector<1x128xf32>
    %211 = arith.mulf %210, %194 : vector<1x128xf32>
    %212 = vector.broadcast %130 : f32 to vector<1x128xf32>
    %213 = arith.addf %211, %212 : vector<1x128xf32>
    %cst_48 = arith.constant 0.000000e+00 : f32
    %214 = vector.broadcast %cst_48 : f32 to vector<1x128xf32>
    %215 = arith.subf %214, %213 : vector<1x128xf32>
    %216 = vector.broadcast %126 : f32 to vector<1x128xf32>
    %217 = arith.mulf %216, %205 : vector<1x128xf32>
    %cst_49 = arith.constant 7.732000e+00 : f32
    %218 = vector.broadcast %cst_49 : f32 to vector<1x128xf32>
    %219 = arith.addf %217, %218 : vector<1x128xf32>
    %cst_50 = arith.constant 0.577350259 : f32
    %220 = vector.broadcast %cst_50 : f32 to vector<1x128xf32>
    %221 = arith.mulf %219, %220 : vector<1x128xf32>
    %cst_51 = arith.constant 1.000000e+00 : f32
    %222 = vector.broadcast %cst_51 : f32 to vector<1x128xf32>
    %223 = arith.divf %222, %221 : vector<1x128xf32>
    %224 = arith.mulf %209, %223 : vector<1x128xf32>
    %c1_52 = arith.constant 1 : index
    %c0_53 = arith.constant 0 : index
    %c0_54 = arith.constant 0 : index
    %c0_55 = arith.constant 0 : index
    %225 = vector.load %arg4[%c1_52, %c0_53, %c0_54, %c0_55] : memref<2x3x1x128xf32, #tpu.memory_space<vmem>>, vector<1x1x1x128xf32>
    %226 = vector.shape_cast %225 : vector<1x1x1x128xf32> to vector<1x128xf32>
    %227 = vector.shape_cast %224 : vector<1x128xf32> to vector<1x1x1x128xf32>
    tpu.vector_store %arg4[%c1_52, %c0_53, %c0_54, %c0_55], %227 {strides = array<i32>} : memref<2x3x1x128xf32, #tpu.memory_space<vmem>>, vector<1x1x1x128xf32>,
    %228 = arith.mulf %215, %223 : vector<1x128xf32>
    %c1_56 = arith.constant 1 : index
    %c1_57 = arith.constant 1 : index
    %c0_58 = arith.constant 0 : index
    %c0_59 = arith.constant 0 : index
    %229 = vector.load %arg4[%c1_56, %c1_57, %c0_58, %c0_59] : memref<2x3x1x128xf32, #tpu.memory_space<vmem>>, vector<1x1x1x128xf32>
    %230 = vector.shape_cast %229 : vector<1x1x1x128xf32> to vector<1x128xf32>
    %231 = vector.shape_cast %228 : vector<1x128xf32> to vector<1x1x1x128xf32>
    tpu.vector_store %arg4[%c1_56, %c1_57, %c0_58, %c0_59], %231 {strides = array<i32>} : memref<2x3x1x128xf32, #tpu.memory_space<vmem>>, vector<1x1x1x128xf32>,
    %c1_60 = arith.constant 1 : index
    %c2_61 = arith.constant 2 : index
    %c0_62 = arith.constant 0 : index
    %c0_63 = arith.constant 0 : index
    %232 = vector.load %arg4[%c1_60, %c2_61, %c0_62, %c0_63] : memref<2x3x1x128xf32, #tpu.memory_space<vmem>>, vector<1x1x1x128xf32>
    %233 = vector.shape_cast %232 : vector<1x1x1x128xf32> to vector<1x128xf32>
    %234 = vector.shape_cast %219 : vector<1x128xf32> to vector<1x1x1x128xf32>
    tpu.vector_store %arg4[%c1_60, %c2_61, %c0_62, %c0_63], %234 {strides = array<i32>} : memref<2x3x1x128xf32, #tpu.memory_space<vmem>>, vector<1x1x1x128xf32>,
    return
  }
  func.func @transform_0(%arg0: i32, %arg1: i32) -> (i32, i32) {
    %c0_i32 = arith.constant 0 : i32
    %c0_i32_0 = arith.constant 0 : i32
    %c0_i32_1 = arith.constant 0 : i32
    return %c0_i32, %c0_i32_0 : i32, i32
  }
  func.func @transform_1(%arg0: i32, %arg1: i32) -> (i32, i32, i32, i32) {
    %c0_i32 = arith.constant 0 : i32
    %c0_i32_0 = arith.constant 0 : i32
    %c0_i32_1 = arith.constant 0 : i32
    return %arg0, %c0_i32, %arg1, %c0_i32_0 : i32, i32, i32, i32
  }
  func.func @transform_2(%arg0: i32, %arg1: i32) -> (i32, i32, i32, i32) {
    %c0_i32 = arith.constant 0 : i32
    %c0_i32_0 = arith.constant 0 : i32
    %c0_i32_1 = arith.constant 0 : i32
    return %arg0, %c0_i32, %arg1, %c0_i32_0 : i32, i32, i32, i32
  }
}

</mosaic_0001>

<bundles_post_ra>
// kernel: tpu_custom_call.1
= control target key start
LH: loop header
LB: loop body
LE: loop exit
PB: predicated region body
PF: predicated region fallthrough
CT: control target
= control target key end

     0   :  { %7 = vsyncpa [#allocation5], 0  ;;  %s423_s0 = inlined_call_operand.hbm [shape: f32[2,8], index: 0, kind: input, shape index: {}]   ;;  %s424_s1 = inlined_call_operand.hbm [shape: f32[2,3,1,128], index: 1, kind: input, shape index: {}]   ;;  %s425_s2 = inlined_call_operand.hbm [shape: f32[2,3,1,128], index: 2, kind: output, shape index: {}]  }
   0x1   :  { %8 = vsyncpa [#allocation3], 0 }
   0x2   :  { %9 = vsyncpa [#allocation4], 0  ;;  %s251_s11 = scalar_lea.hbm %s423_s0, 32 }
   0x3   :  { %p252_p0 = scmp.ne.s32.totalorder %s423_s0, %s251_s11  ;;  %p255_p1 = scmp.lt.u32.totalorder %s251_s11, %s423_s0 }
   0x5   :  { %p257_p2 = pnand %p255_p1, %p252_p0 }
   0x7   :  { %260 = shalt.err (!%p257_p2)
}
   0x8   :  { %s311_s16 = smov [#allocation2]   ;;  %s312_s19 = smov [#allocation6]  }
   0x9   :  { %17 = dma.hbm_to_smem %s423_s0, 32, %s311_s16, [#allocation5]  }
   0xa   :  { %s23_s20 = sshll.u32 %s312_s19, 4  ;;  %s261_s23 = scalar_lea.hbm %s424_s1, 96  ;;  %s24_s20 = int_to_ptr.vmem [resolvable:$true] %s23_s20 }
   0xb   :  { %p262_p3 = scmp.ne.s32.totalorder %s424_s1, %s261_s23  ;;  %p265_p4 = scmp.lt.u32.totalorder %s261_s23, %s424_s1 }
   0xd   :  { %p267_p5 = pnand %p265_p4, %p262_p3 }
   0xf   :  { %270 = shalt.err (!%p267_p5)
}
  0x10   :  { %s271_s28 = scalar_lea.vmem %s24_s20, 96  ;;  %p276_p7 = scmp.lt.s32.totalorder %s24_s20, %s24_s20 }
  0x11   :  { %p272_p6 = scmp.ne.s32.totalorder %s24_s20, %s271_s28  ;;  %p277_p8 = scmp.lt.s32.totalorder %s271_s28, %s271_s28 }
  0x13   :  { %p278_p9 = por %p277_p8, %p276_p7 }
  0x15   :  { %p279_p10 = pnand %p278_p9, %p272_p6 }
  0x17   :  { %282 = shalt.err (!%p279_p10)
}
  0x18   :  { %s313_s0 = smov 16   ;;  %s314_s29 = smov 1  }
  0x19   :  { %29 = dma.hbm_to_vmem [thread:$0]  %s424_s1, 96, %s24_s20, [#allocation3], %s313_s0, %s313_s0, %s314_s29  }
  0x1a   :  { %305 = dma.done.wait [#allocation5], 32  }
  0x1b   :  { %306 = vsyncadd [#allocation5], 4294967264 }
  0x1c   :  { %307 = dma.done.wait [#allocation3], 96  }
  0x1d   :  { %308 = vsyncadd [#allocation3], 4294967200 }
  0x1e   :  { %36 = sfence }
  0x1f   :  { %s231_s4 = sld [smem:[#allocation2 + $0x3]]  ;;  %s232_s5 = sld [smem:[#allocation2 + $0x4]]  ;;  %v38_v0 = vld [vmem:[#allocation6] sm:$0x1]  ;;  %v40_v2 = vld [vmem:[#allocation6 + $0x1] sm:$0x1] }
  0x20   :  { %s233_s6 = sld [smem:[#allocation2 + $0x5]]  ;;  %s234_s7 = sld [smem:[#allocation2 + $0x6]]  ;;  %v76_v1 = vsub.f32 0.0, %v38_v0  ;;  %v42_v3 = vld [vmem:[#allocation6 + $0x2] sm:$0x1] }
  0x21   :  { %s358_s8 = sld [smem:[#allocation2]]  ;;  %s360_s9 = sld [smem:[#allocation2 + $0x84]]  ;;  %v125_v18 = vld [vmem:[#allocation6 + $0x3] sm:$0x1]  ;;  %v127_v35 = vld [vmem:[#allocation6 + $0x4] sm:$0x1] }
  0x22   :  { %s362_s10 = sld [smem:[#allocation2 + $0x85]]  ;;  %s364_s1 = sld [smem:[#allocation2 + $0x86]]  ;;  %v163_v27 = vsub.f32 0.0, %v125_v18  ;;  %v129_v52 = vld [vmem:[#allocation6 + $0x5] sm:$0x1] }
  0x23   :  { %s366_s11 = sld [smem:[#allocation2 + $0x83]]  ;;  %s390_s12 = sld [smem:[#allocation2 + $0x2]] }
  0x24   :  { %s235_s13 = sld [smem:[#allocation2 + $0x80]]  ;;  %s393_s14 = sld [smem:[#allocation2 + $0x1]] }
  0x25   :  { %v57_v4 = vstv %s232_s5  ;;  %v65_v5 = vstv %s231_s4  ;;  %s237_s15 = sld [smem:[#allocation2 + $0x82]]  ;;  %s236_s16 = sld [smem:[#allocation2 + $0x81]] }
  0x26   :  { %v58_v6 = vmul.f32 %v57_v4, %v38_v0  ;;  %v59_v7 = vstv %s233_s6  ;;  %v62_v8 = vstv %s234_s7  ;;  %v66_v9 = vmul.f32 %v65_v5, %v38_v0  ;;  %s315_s17 = smov [#allocation7]  }
  0x27   :  { %v60_v10 = vmul.f32 %v59_v7, %v40_v2  ;;  %v63_v11 = vmul.f32 %v62_v8, %v42_v3  ;;  %v67_v12 = vmul.f32 %v62_v8, %v40_v2  ;;  %v69_v13 = vmul.f32 %v59_v7, %v42_v3  ;;  %s216_s18 = sshll.u32 %s315_s17, 4  ;;  %s217_s18 = int_to_ptr.vmem [resolvable:$true] %s216_s18 }
  0x28   :  { %v71_v14 = vmul.f32 %v62_v8, %v38_v0  ;;  %v72_v15 = vmul.f32 %v65_v5, %v40_v2  ;;  %v74_v16 = vmul.f32 %v57_v4, %v42_v3  ;;  %v77_v17 = vmul.f32 %v76_v1, %v59_v7  ;;  %s283_s19 = scalar_lea.vmem %s217_s18, 96  ;;  %p288_p12 = scmp.lt.s32.totalorder %s217_s18, %s217_s18 }
  0x29   :  { %v61_v19 = vadd.f32 %v60_v10, %v58_v6  ;;  %v68_v20 = vsub.f32 %v66_v9, %v67_v12  ;;  %v78_v21 = vmul.f32 %v57_v4, %v40_v2  ;;  %v80_v22 = vmul.f32 %v65_v5, %v42_v3  ;;  %p284_p11 = scmp.ne.s32.totalorder %s217_s18, %s283_s19  ;;  %p289_p13 = scmp.lt.s32.totalorder %s283_s19, %s283_s19 }
  0x2a   :  { %v73_v23 = vadd.f32 %v72_v15, %v71_v14  ;;  %v369_v29 = vstv %s358_s8  ;;  %v372_v30 = vstv %s360_s9  ;;  %v375_v31 = vstv %s362_s10 }
  0x2b   :  { %v64_v24 = vadd.f32 %v63_v11, %v61_v19  ;;  %v70_v25 = vadd.f32 %v69_v13, %v68_v20  ;;  %v79_v26 = vadd.f32 %v78_v21, %v77_v17  ;;  %v145_v36 = vmul.f32 %v372_v30, %v125_v18  ;;  %p290_p0 = por %p289_p13, %p288_p12 }
  0x2c   :  { %v75_v28 = vsub.f32 %v73_v23, %v74_v16  ;;  %v147_v39 = vmul.f32 %v375_v31, %v127_v35  ;;  %v380_v40 = vstv %s364_s1  ;;  %v152_v44 = vstv %s366_s11 }
  0x2d   :  { %v81_v32 = vadd.f32 %v80_v22, %v79_v26  ;;  %v82_v33 = vmul.f32 %v70_v25, %v65_v5  ;;  %v83_v34 = vmul.f32 %v64_v24, %v57_v4  ;;  %v99_v42 = vmul.f32 %v70_v25, %v59_v7  ;;  %p291_p1 = pnand %p290_p0, %p284_p11 }
  0x2e   :  { %v97_v37 = vmul.f32 %v75_v28, %v57_v4  ;;  %v89_v38 = vmul.f32 %v75_v28, %v65_v5  ;;  %v101_v47 = vmul.f32 %v64_v24, %v62_v8  ;;  %v92_v48 = vmul.f32 %v64_v24, %v59_v7 }
  0x2f   :  { %v96_v41 = vmul.f32 %v81_v32, %v65_v5  ;;  %v90_v43 = vmul.f32 %v81_v32, %v57_v4  ;;  %v84_v45 = vadd.f32 %v83_v34, %v82_v33  ;;  %v85_v46 = vmul.f32 %v81_v32, %v59_v7 }
  0x30   :  { %v94_v51 = vmul.f32 %v70_v25, %v62_v8  ;;  %v153_v53 = vmul.f32 %v152_v44, %v125_v18  ;;  %v148_v54 = vadd.f32 %v147_v39, %v145_v36  ;;  %v154_v55 = vmul.f32 %v380_v40, %v127_v35 }
  0x31   :  { %v98_v49 = vadd.f32 %v97_v37, %v96_v41  ;;  %v91_v50 = vsub.f32 %v89_v38, %v90_v43  ;;  %v156_v56 = vmul.f32 %v375_v31, %v129_v52  ;;  %v158_v57 = vmul.f32 %v380_v40, %v125_v18 }
  0x32   :  { %v150_v60 = vmul.f32 %v380_v40, %v129_v52  ;;  %v159_v61 = vmul.f32 %v152_v44, %v127_v35  ;;  %v155_v62 = vsub.f32 %v153_v53, %v154_v55  ;;  %v161_v63 = vmul.f32 %v372_v30, %v129_v52 }
  0x33   :  { %v100_v58 = vsub.f32 %v98_v49, %v99_v42  ;;  %v93_v59 = vadd.f32 %v92_v48, %v91_v50  ;;  %v164_v0 = vmul.f32 %v163_v27, %v375_v31  ;;  %v165_v1 = vmul.f32 %v372_v30, %v127_v35 }
  0x34   :  { %v87_v2 = vmul.f32 %v75_v28, %v62_v8  ;;  %v160_v4 = vadd.f32 %v159_v61, %v158_v57  ;;  %v86_v5 = vadd.f32 %v85_v46, %v84_v45  ;;  %v157_v6 = vadd.f32 %v156_v56, %v155_v62 }
  0x35   :  { %v102_v3 = vadd.f32 %v101_v47, %v100_v58  ;;  %v166_v7 = vadd.f32 %v165_v1, %v164_v0  ;;  %v167_v9 = vmul.f32 %v152_v44, %v129_v52  ;;  %v95_v11 = vadd.f32 %v94_v51, %v93_v59 }
  0x36   :  { %v162_v12 = vsub.f32 %v160_v4, %v161_v63  ;;  %v151_v13 = vadd.f32 %v150_v60, %v148_v54  ;;  %v88_v16 = vsub.f32 %v86_v5, %v87_v2  ;;  %v186_v19 = vmul.f32 %v157_v6, %v375_v31 }
  0x37   :  { %v111_v10 = vmul.f32 %v369_v29, %v102_v3  ;;  %v168_v14 = vadd.f32 %v167_v9, %v166_v7  ;;  %v107_v21 = vmul.f32 %v369_v29, %v95_v11  ;;  %v169_v22 = vmul.f32 %v157_v6, %v152_v44 }
  0x38   :  { %v184_v8 = vmul.f32 %v162_v12, %v372_v30  ;;  %v170_v17 = vmul.f32 %v151_v13, %v372_v30  ;;  %v176_v23 = vmul.f32 %v162_v12, %v152_v44  ;;  %v188_v25 = vmul.f32 %v151_v13, %v380_v40 }
  0x39   :  { %v112_v15 = vadd.f32 7.732, %v111_v10  ;;  %v183_v18 = vmul.f32 %v168_v14, %v152_v44  ;;  %v177_v26 = vmul.f32 %v168_v14, %v372_v30  ;;  %v179_v27 = vmul.f32 %v151_v13, %v375_v31 }
  0x3a   :  { %v108_v28 = vstv %s390_s12  ;;  %v171_v34 = vadd.f32 %v170_v17, %v169_v22  ;;  %v172_v35 = vmul.f32 %v168_v14, %v375_v31  ;;  %v190_v36 = vstv %s235_s13 }
  0x3b   :  { %v113_v20 = vmul.f32 0.57735026, %v112_v15  ;;  %122 = vst [vmem:[#allocation7 + $0x2] sm:$0x1] %v112_v15  ;;  %v185_v24 = vadd.f32 %v184_v8, %v183_v18  ;;  %v178_v33 = vsub.f32 %v176_v23, %v177_v26  ;;  %v181_v37 = vmul.f32 %v157_v6, %v380_v40 }
  0x3c   :  { %v104_v38 = vmul.f32 %v369_v29, %v88_v16  ;;  %v109_v39 = vadd.f32 %v108_v28, %v107_v21  ;;  %v105_v43 = vstv %s393_s14  ;;  %v173_v44 = vadd.f32 %v172_v35, %v171_v34 }
  0x3d   :  { %247 = vrcp.f32 %v113_v20  ;;  %v187_v32 = vsub.f32 %v185_v24, %v186_v19  ;;  %v180_v42 = vadd.f32 %v179_v27, %v178_v33  ;;  %v174_v45 = vmul.f32 %v162_v12, %v380_v40 }
  0x3e   :  { %v106_v47 = vadd.f32 %v105_v43, %v104_v38  ;;  %v110_v48 = vsub.f32 0.0, %v109_v39  ;;  %v195_v54 = vstv %s237_s15  ;;  %v192_v57 = vstv %s236_s16 }
  0x3f   :  { %v189_v41 = vadd.f32 %v188_v25, %v187_v32  ;;  %v182_v46 = vadd.f32 %v181_v37, %v180_v42  ;;  %v175_v51 = vsub.f32 %v173_v44, %v174_v45 }
  0x41   :  { %v198_v30 = vmul.f32 %v190_v36, %v189_v41  ;;  %v194_v52 = vmul.f32 %v190_v36, %v182_v46  ;;  %v191_v55 = vmul.f32 %v190_v36, %v175_v51 }
  0x43   :  { %v199_v49 = vadd.f32 7.732, %v198_v30  ;;  %v196_v56 = vadd.f32 %v195_v54, %v194_v52  ;;  %v193_v40 = vadd.f32 %v192_v57, %v191_v55 }
  0x45   :  { %v200_v31 = vmul.f32 0.57735026, %v199_v49  ;;  %210 = vst [vmem:[#allocation7 + $0x5] sm:$0x1] %v199_v49  ;;  %v197_v58 = vsub.f32 0.0, %v196_v56 }
  0x47   :  { %v248_v50 = vpop.eup %247  ;;  %249 = vrcp.f32 %v200_v31 }
  0x48   :  { %v116_v29 = vmul.f32 %v248_v50, %v106_v47  ;;  %v118_v53 = vmul.f32 %v248_v50, %v110_v48 }
  0x4a   :  { %117 = vst [vmem:[#allocation7] sm:$0x1] %v116_v29  ;;  %120 = vst [vmem:[#allocation7 + $0x1] sm:$0x1] %v118_v53 }
  0x51   :  { %v250_v59 = vpop.eup %249 }
  0x52   :  { %v203_v60 = vmul.f32 %v250_v59, %v193_v40  ;;  %v206_v61 = vmul.f32 %v250_v59, %v197_v58 }
  0x54   :  { %205 = vst [vmem:[#allocation7 + $0x3] sm:$0x1] %v203_v60  ;;  %208 = vst [vmem:[#allocation7 + $0x4] sm:$0x1] %v206_v61 }
  0x55   :  { %294 = shalt.err (!%p291_p1)
}
  0x56   :  { %s295_s22 = scalar_lea.hbm %s425_s2, 96 }
  0x57   :  { %p296_p2 = scmp.ne.s32.totalorder %s425_s2, %s295_s22  ;;  %p299_p3 = scmp.lt.u32.totalorder %s295_s22, %s425_s2 }
  0x59   :  { %p301_p4 = pnand %p299_p3, %p296_p2 }
  0x5b   :  { %304 = shalt.err (!%p301_p4)
}
  0x5c   :  { %222 = dma.vmem_to_hbm [thread:$0]  %s217_s18, 96, %s425_s2, [#allocation4], %s313_s0, %s313_s0, %s314_s29  }
  0x5d   :  { %309 = dma.done.wait [#allocation4], 96  }
  0x5e   :  { %310 = vsyncadd [#allocation4], 4294967200 }
  0x5f   :  { %226 = vsyncpa [#allocation3], 1 }
  0x60   :  { %227 = vsyncpa [#allocation4], 1 }
  0x61   :  { %228 = vsyncpa [#allocation5], 1 }

</bundles_post_ra>
